<compile_context>
chip_gen: v7x
topology: tpu7x:2x2x1
jax: 0.10.0
libtpu: 0.0.40
codegen_flags: <defaults>
</compile_context>

<pallas_src>
import jax
import jax.numpy as jnp
from jax import lax
from jax.experimental import pallas as pl
from jax.experimental.pallas import tpu as pltpu


def _rope_kernel(cos_ref, sin_ref, x_ref, o_ref):
    # cos_ref, sin_ref: (TR, L) float32 tables (sin carries the per-pair sign)
    # x_ref, o_ref:     (TBH, TR, L) tiles in the original interleaved layout
    x = x_ref[...].astype(jnp.float32)
    c = cos_ref[...]
    s = sin_ref[...]

    L = x.shape[-1]
    lane_axis = x.ndim - 1
    # Pair swap (x0,x1,x2,x3,...) -> (x1,x0,x3,x2,...): select between the
    # two single-lane rotations by lane parity.  The wrapped-around lanes of
    # each roll are masked out by the select, and pairs never straddle a row
    # boundary because both D and L are even.
    left = pltpu.roll(x, shift=L - 1, axis=lane_axis)   # left[i]  = x[i+1]
    right = pltpu.roll(x, shift=1, axis=lane_axis)      # right[i] = x[i-1]
    lane = lax.broadcasted_iota(jnp.int32, (1, L), 1)   # hoisted, computed once
    even = (lane % 2) == 0
    x_swap = jnp.where(even, left, right)

    # out[2k]   = x[2k]*cos   - x[2k+1]*sin   (sign folded into sin table)
    # out[2k+1] = x[2k+1]*cos + x[2k]*sin
    o_ref[...] = (x * c + x_swap * s).astype(o_ref.dtype)


def _divisors_desc(n):
    return [d for d in range(n, 0, -1) if n % d == 0]


def _tpu_budgets():
    """Return (vmem_limit_bytes, num_tensorcores) for the attached TPU."""
    kind = ""
    try:
        kind = jax.devices()[0].device_kind.lower()
    except Exception:
        pass
    vmem_cap = None
    try:
        vmem_cap = int(pltpu.get_tpu_info().vmem_capacity_bytes)
    except Exception:
        vmem_cap = None
    if vmem_cap is None:
        vmem_cap = 64 * 2**20 if "v7" in kind else 128 * 2**20
    # 64-MiB-VMEM parts (v7x): keep scoped limit conservative; 128-MiB parts
    # (v5e/v6e/v5p): use the headroom for bigger slabs.
    vmem_limit = 44 * 2**20 if vmem_cap <= 72 * 2**20 else 100 * 2**20
    n_tc = 2 if ("v7" in kind or "v4" in kind or "v5p" in kind) else 1
    return vmem_limit, n_tc


def rope_1d_pallas(x, pos_indices, base=10000.0):
    """1D RoPE, matching RotaryPositionalEmbedding1D.forward.

    Args:
      x:           [B, H, S, D]
      pos_indices: [S]
    Returns:
      same shape/dtype as x.
    """
    B, H, S, D = x.shape
    assert D % 2 == 0, "head_dim must be even for RoPE"
    Dh = D // 2
    BH = B * H

    itemsize = jnp.dtype(x.dtype).itemsize
    pack = 8 * max(1, 4 // itemsize)    # sublane pack: 8 f32 / 16 bf16 / 32 i8

    # ---- tiny wrapper-side tables (float32, interleaved pair layout) ------
    inv_freq = 1.0 / (base ** (jnp.arange(0, D, 2)[:Dh].astype(jnp.float32) / D))
    ang = pos_indices.astype(jnp.float32)[:, None] * inv_freq[None, :]   # (S, Dh)
    ang = jnp.repeat(ang, 2, axis=-1)                                    # (S, D)
    cos_t = jnp.cos(ang)
    sign = jnp.where((jnp.arange(D) % 2) == 0, -1.0, 1.0).astype(jnp.float32)
    sin_t = jnp.sin(ang) * sign[None, :]                                 # sign folded in

    # ---- lane-dense folding: (S, D) -> (R, L) ------------------------------
    # Prefer an L that also makes R a multiple of the sublane pack so every
    # block along R is an unmasked full tile.
    L = D
    chosen = None
    for cand in (512, 256, 128):
        if (S * D) % cand == 0 and ((S * D) // cand) % pack == 0:
            chosen = cand
            break
    if chosen is None:
        for cand in (512, 256, 128):
            if (S * D) % cand == 0:
                chosen = cand
                break
    if chosen is not None:
        L = chosen
    R = (S * D) // L

    x_f = x.reshape(BH, R, L)          # contiguous reshape: no data movement
    cos_f = cos_t.reshape(R, L)
    sin_f = sin_t.reshape(R, L)

    # ---- generation-aware tile sizing --------------------------------------
    vmem_limit, n_tc = _tpu_budgets()
    compute_budget = int(vmem_limit * 0.80)   # leave headroom for misc scratch

    # TR: block along the folded sequence axis.  Legal choices are TR == R
    # (full dim) or TR % pack == 0.  Cap the per-slab table footprint so
    # cos/sin VMEM no longer scales with S*D.
    table_slab_budget = 1 * 2**20 if vmem_limit <= 48 * 2**20 else 2 * 2**20
    max_tr = max(1, table_slab_budget // (L * 4))
    pack_ok = [d for d in _divisors_desc(R) if d == R or d % pack == 0]
    tr_cands = [d for d in pack_ok if d <= max_tr]
    TR = tr_cands[0] if tr_cands else min(pack_ok)

    # TBH: budget covers 2x2 x/out pipeline buffers, 2x2 table slabs, and
    # ~4 block-sized fp32 temporaries inside the kernel.
    def per_step_bytes(tbh, tr):
        blk = tbh * tr * L
        return 4 * blk * itemsize + 4 * tr * L * 4 + 4 * blk * 4

    tbh = 1
    for d in _divisors_desc(BH):
        if per_step_bytes(d, TR) <= compute_budget:
            tbh = d
            break

    # Only force >=2 grid steps on multi-TensorCore parts (v7x / megacore);
    # on 1-TC parts a smaller tile just adds per-step overhead.
    if n_tc >= 2 and (R // TR) * (BH // tbh) < 2:
        if BH >= 2:
            tbh = next(d for d in _divisors_desc(BH) if d <= max(1, BH // 2))
        else:
            smaller = [d for d in pack_ok if d < TR]
            if smaller:
                TR = smaller[0]

    grid = (R // TR, BH // tbh)   # R outer: table block fixed across inner BH sweep

    out_f = pl.pallas_call(
        _rope_kernel,
        out_shape=jax.ShapeDtypeStruct((BH, R, L), x.dtype),
        grid=grid,
        in_specs=[
            pl.BlockSpec((TR, L), lambda r, b: (r, 0)),           # cos slab
            pl.BlockSpec((TR, L), lambda r, b: (r, 0)),           # sin slab
            pl.BlockSpec((tbh, TR, L), lambda r, b: (b, r, 0)),   # x tile
        ],
        out_specs=pl.BlockSpec((tbh, TR, L), lambda r, b: (b, r, 0)),
        compiler_params=pltpu.CompilerParams(
            dimension_semantics=("parallel", "parallel"),
            vmem_limit_bytes=vmem_limit,
        ),
        cost_estimate=pl.CostEstimate(
            flops=6 * BH * S * D,
            transcendentals=0,
            bytes_accessed=2 * BH * S * D * itemsize + 2 * S * D * 4,
        ),
    )(cos_f, sin_f, x_f)

    return out_f.reshape(B, H, S, D)


def rope_1d_reference(x, pos_indices, base=10000.0):
    """Pure-JAX reference mirroring the PyTorch module exactly."""
    D = x.shape[-1]
    freqs = 1.0 / (base ** (jnp.arange(0, D, 2)[: D // 2].astype(jnp.float32) / D))
    f = pos_indices.astype(jnp.float32)[:, None] * freqs[None, :]   # [S, D/2]
    f = jnp.repeat(f, 2, axis=-1)                                   # '... n -> ... (n r)'
    cos = jnp.cos(f)[None, None]
    sin = jnp.sin(f)[None, None]
    xf = x.astype(jnp.float32)
    xr = xf.reshape(*x.shape[:-1], D // 2, 2)
    x1, x2 = xr[..., 0], xr[..., 1]
    rot = jnp.stack([-x2, x1], axis=-1).reshape(x.shape)
    return (xf * cos + rot * sin).astype(x.dtype)


if __name__ == "__main__":
    B, H, S, D = 2, 4, 8, 32
    key = jax.random.PRNGKey(0)
    x = jax.random.normal(key, (B, H, S, D), dtype=jnp.float32)
    pos_indices = jnp.arange(S, dtype=jnp.int32)

    out = jax.block_until_ready(rope_1d_pallas(x, pos_indices))

    ref = rope_1d_reference(x, pos_indices)
    assert out.shape == x.shape and out.dtype == x.dtype
    assert jnp.allclose(out, ref, atol=1e-5, rtol=1e-5), "mismatch vs reference"
    print("KERNEL_OK")
</pallas_src>

<mosaic_0001>
module attributes {stable_mosaic.version = 11 : i64} {
  func.func @_rope_kernel(%arg0: i32, %arg1: i32, %arg2: memref<1x256xf32, #tpu.memory_space<vmem>>, %arg3: memref<1x256xf32, #tpu.memory_space<vmem>>, %arg4: memref<8x1x256xf32, #tpu.memory_space<vmem>>, %arg5: memref<8x1x256xf32, #tpu.memory_space<vmem>>) attributes {dimension_semantics = [#tpu.dimension_semantics<parallel>, #tpu.dimension_semantics<parallel>], iteration_bounds = array<i64: 1, 1>, scalar_prefetch = 0 : i64, scratch_operands = 0 : i64, tpu.core_type = #tpu.core_type<tc>, window_params = [{transform_indices = @transform_0, window_bounds = array<i64: 1, 256>}, {transform_indices = @transform_1, window_bounds = array<i64: 1, 256>}, {transform_indices = @transform_2, window_bounds = array<i64: 8, 1, 256>}, {transform_indices = @transform_3, window_bounds = array<i64: 8, 1, 256>}]} {
    %c0 = arith.constant 0 : index
    %c0_0 = arith.constant 0 : index
    %c0_1 = arith.constant 0 : index
    %0 = vector.load %arg4[%c0, %c0_0, %c0_1] : memref<8x1x256xf32, #tpu.memory_space<vmem>>, vector<8x1x256xf32>
    %c0_2 = arith.constant 0 : index
    %c0_3 = arith.constant 0 : index
    %1 = vector.load %arg2[%c0_2, %c0_3] : memref<1x256xf32, #tpu.memory_space<vmem>>, vector<1x256xf32>
    %c0_4 = arith.constant 0 : index
    %c0_5 = arith.constant 0 : index
    %2 = vector.load %arg3[%c0_4, %c0_5] : memref<1x256xf32, #tpu.memory_space<vmem>>, vector<1x256xf32>
    %c255_i32 = arith.constant 255 : i32
    %3 = tpu.dynamic_rotate %0 by %c255_i32 dim 2 : vector<8x1x256xf32>, i32 -> vector<8x1x256xf32>
    %c1_i32 = arith.constant 1 : i32
    %4 = tpu.dynamic_rotate %0 by %c1_i32 dim 2 : vector<8x1x256xf32>, i32 -> vector<8x1x256xf32>
    %5 = tpu.iota {dimensions = array<i32: 1>} : vector<1x256xi32>
    %c2_i32 = arith.constant 2 : i32
    %c0_i32 = arith.constant 0 : i32
    %6 = arith.cmpi eq, %c2_i32, %c0_i32 : i32
    %c1_i32_6 = arith.constant 1 : i32
    %7 = arith.select %6, %c1_i32_6, %c2_i32 : i32
    %8 = vector.broadcast %7 : i32 to vector<1x256xi32>
    %9 = arith.remsi %5, %8 : vector<1x256xi32>
    %c0_i32_7 = arith.constant 0 : i32
    %10 = vector.broadcast %c0_i32_7 : i32 to vector<1x256xi32>
    %11 = arith.cmpi ne, %9, %10 : vector<1x256xi32>
    %c0_i32_8 = arith.constant 0 : i32
    %12 = vector.broadcast %c0_i32_8 : i32 to vector<1x256xi32>
    %13 = arith.cmpi slt, %9, %12 : vector<1x256xi32>
    %c0_i32_9 = arith.constant 0 : i32
    %14 = arith.cmpi slt, %7, %c0_i32_9 : i32
    %15 = vector.broadcast %14 : i1 to vector<1x256xi1>
    %16 = vector.broadcast %15 : vector<1x256xi1> to vector<1x256xi1>
    %17 = arith.xori %13, %16 : vector<1x256xi1>
    %18 = arith.andi %17, %11 : vector<1x256xi1>
    %19 = vector.broadcast %7 : i32 to vector<1x256xi32>
    %20 = arith.addi %9, %19 : vector<1x256xi32>
    %21 = arith.select %18, %20, %9 : vector<1x256xi1>, vector<1x256xi32>
    %c0_i32_10 = arith.constant 0 : i32
    %22 = vector.broadcast %c0_i32_10 : i32 to vector<1x256xi32>
    %23 = arith.cmpi eq, %21, %22 : vector<1x256xi32>
    %24 = vector.shape_cast %23 : vector<1x256xi1> to vector<1x1x256xi1>
    %25 = vector.broadcast %24 : vector<1x1x256xi1> to vector<8x1x256xi1>
    %26 = arith.select %25, %3, %4 : vector<8x1x256xi1>, vector<8x1x256xf32>
    %27 = vector.shape_cast %1 : vector<1x256xf32> to vector<1x1x256xf32>
    %28 = vector.broadcast %27 : vector<1x1x256xf32> to vector<8x1x256xf32>
    %29 = arith.mulf %0, %28 : vector<8x1x256xf32>
    %30 = vector.shape_cast %2 : vector<1x256xf32> to vector<1x1x256xf32>
    %31 = vector.broadcast %30 : vector<1x1x256xf32> to vector<8x1x256xf32>
    %32 = arith.mulf %26, %31 : vector<8x1x256xf32>
    %33 = arith.addf %29, %32 : vector<8x1x256xf32>
    %c0_11 = arith.constant 0 : index
    %c0_12 = arith.constant 0 : index
    %c0_13 = arith.constant 0 : index
    %34 = vector.load %arg5[%c0_11, %c0_12, %c0_13] : memref<8x1x256xf32, #tpu.memory_space<vmem>>, vector<8x1x256xf32>
    tpu.vector_store %arg5[%c0_11, %c0_12, %c0_13], %33 {strides = array<i32>} : memref<8x1x256xf32, #tpu.memory_space<vmem>>, vector<8x1x256xf32>,
    return
  }
  func.func @transform_0(%arg0: i32, %arg1: i32) -> (i32, i32) {
    %c0_i32 = arith.constant 0 : i32
    %c0_i32_0 = arith.constant 0 : i32
    return %arg0, %c0_i32 : i32, i32
  }
  func.func @transform_1(%arg0: i32, %arg1: i32) -> (i32, i32) {
    %c0_i32 = arith.constant 0 : i32
    %c0_i32_0 = arith.constant 0 : i32
    return %arg0, %c0_i32 : i32, i32
  }
  func.func @transform_2(%arg0: i32, %arg1: i32) -> (i32, i32, i32) {
    %c0_i32 = arith.constant 0 : i32
    %c0_i32_0 = arith.constant 0 : i32
    return %arg1, %arg0, %c0_i32 : i32, i32, i32
  }
  func.func @transform_3(%arg0: i32, %arg1: i32) -> (i32, i32, i32) {
    %c0_i32 = arith.constant 0 : i32
    %c0_i32_0 = arith.constant 0 : i32
    return %arg1, %arg0, %c0_i32 : i32, i32, i32
  }
}

</mosaic_0001>

<bundles_post_ra>
// kernel: tpu_custom_call.1
= control target key start
LH: loop header
LB: loop body
LE: loop exit
PB: predicated region body
PF: predicated region fallthrough
CT: control target
= control target key end

     0   :  { %8 = vsyncpa [#allocation3], 0  ;;  %s1018_s0 = inlined_call_operand.hbm [shape: f32[1,256], index: 0, kind: input, shape index: {}]   ;;  %s1019_s1 = inlined_call_operand.hbm [shape: f32[1,256], index: 1, kind: input, shape index: {}]   ;;  %s1020_s2 = inlined_call_operand.hbm [shape: f32[8,1,256], index: 2, kind: input, shape index: {}]   ;;  %s1021_s3 = inlined_call_operand.hbm [shape: f32[8,1,256], index: 3, kind: output, shape index: {}]  }
   0x1   :  { %9 = vsyncpa [#allocation6], 0 }
   0x2   :  { %10 = vsyncpa [#allocation4], 0  ;;  %s617_s12 = smov [#allocation5]   ;;  %s618_s14 = smov [#allocation2]  }
   0x3   :  { %s27_s13 = sshll.u32 %s617_s12, 4  ;;  %s17_s15 = sshll.u32 %s618_s14, 4  ;;  %s28_s13 = int_to_ptr.vmem [resolvable:$true] %s27_s13  ;;  %s18_s15 = int_to_ptr.vmem [resolvable:$true] %s17_s15 }
   0x4   :  { %s523_s18 = scalar_lea.hbm %s1019_s1, 32 }
   0x5   :  { %p524_p0 = scmp.ne.s32.totalorder %s1019_s1, %s523_s18  ;;  %p527_p1 = scmp.lt.u32.totalorder %s523_s18, %s1019_s1 }
   0x7   :  { %p529_p2 = pnand %p527_p1, %p524_p0 }
   0x9   :  { %532 = shalt.err (!%p529_p2)
}
   0xa   :  { %s533_s23 = scalar_lea.vmem %s28_s13, 32  ;;  %p538_p4 = scmp.lt.s32.totalorder %s28_s13, %s28_s13 }
   0xb   :  { %p534_p3 = scmp.ne.s32.totalorder %s28_s13, %s533_s23  ;;  %p539_p5 = scmp.lt.s32.totalorder %s533_s23, %s533_s23 }
   0xd   :  { %p540_p6 = por %p539_p5, %p538_p4 }
   0xf   :  { %p541_p7 = pnand %p540_p6, %p534_p3 }
  0x11   :  { %544 = shalt.err (!%p541_p7)
}
  0x12   :  { %30 = dma.hbm_to_vmem [thread:$0]  %s1019_s1, 32, %s28_s13, [#allocation6]  }
  0x13   :  { %s545_s28 = scalar_lea.hbm %s1018_s0, 32 }
  0x14   :  { %p546_p8 = scmp.ne.s32.totalorder %s1018_s0, %s545_s28  ;;  %p549_p9 = scmp.lt.u32.totalorder %s545_s28, %s1018_s0 }
  0x16   :  { %p551_p10 = pnand %p549_p9, %p546_p8 }
  0x18   :  { %554 = shalt.err (!%p551_p10)
}
  0x19   :  { %s555_s6 = scalar_lea.vmem %s18_s15, 32  ;;  %p560_p12 = scmp.lt.s32.totalorder %s18_s15, %s18_s15 }
  0x1a   :  { %p556_p11 = scmp.ne.s32.totalorder %s18_s15, %s555_s6  ;;  %p561_p13 = scmp.lt.s32.totalorder %s555_s6, %s555_s6 }
  0x1c   :  { %p562_p0 = por %p561_p13, %p560_p12 }
  0x1e   :  { %p563_p1 = pnand %p562_p0, %p556_p11 }
  0x20   :  { %566 = shalt.err (!%p563_p1)
}
  0x21   :  { %20 = dma.hbm_to_vmem [thread:$0]  %s1018_s0, 32, %s18_s15, [#allocation3]  }
  0x22   :  { %s619_s8 = smov [#allocation7]   ;;  %s567_s12 = scalar_lea.hbm %s1020_s2, 256 }
  0x23   :  { %s36_s9 = sshll.u32 %s619_s8, 4  ;;  %p568_p2 = scmp.ne.s32.totalorder %s1020_s2, %s567_s12  ;;  %s37_s9 = int_to_ptr.vmem [resolvable:$true] %s36_s9 }
  0x24   :  { %p571_p3 = scmp.lt.u32.totalorder %s567_s12, %s1020_s2 }
  0x26   :  { %p573_p4 = pnand %p571_p3, %p568_p2 }
  0x28   :  { %576 = shalt.err (!%p573_p4)
}
  0x29   :  { %s577_s18 = scalar_lea.vmem %s37_s9, 256  ;;  %p582_p6 = scmp.lt.s32.totalorder %s37_s9, %s37_s9 }
  0x2a   :  { %p578_p5 = scmp.ne.s32.totalorder %s37_s9, %s577_s18  ;;  %p583_p7 = scmp.lt.s32.totalorder %s577_s18, %s577_s18 }
  0x2c   :  { %p584_p8 = por %p583_p7, %p582_p6 }
  0x2e   :  { %p585_p9 = pnand %p584_p8, %p578_p5 }
  0x30   :  { %588 = shalt.err (!%p585_p9)
}
  0x31   :  { %s620_s0 = smov 32   ;;  %s621_s15 = smov 2  }
  0x32   :  { %42 = dma.hbm_to_vmem [thread:$0]  %s1020_s2, 256, %s37_s9, [#allocation6], %s620_s0, %s620_s0, %s621_s15  }
  0x33   :  { %611 = dma.done.wait [#allocation3], 32  }
  0x34   :  { %612 = vsyncadd [#allocation3], 4294967264 }
  0x35   :  { %613 = dma.done.wait [#allocation6], 288  }
  0x36   :  { %614 = vsyncadd [#allocation6], 4294967008  ;;  %v70_v0 = vlaneseq  ;;  %v691_v3 = vld [vmem:[#allocation7 + $0x4] sm:$0x3]  ;;  %v693_v4 = vld [vmem:[#allocation7] sm:$0x3] }
  0x37   :  { %v699_v7 = vld [vmem:[#allocation7 + $0x6] sm:$0x3]  ;;  %v701_v8 = vld [vmem:[#allocation7 + $0x2] sm:$0x3]  ;;  %s622_s2 = smov 127   ;;  %s623_s21 = smov 1  }
  0x38   :  { %v686_v1 = vshrl.u32 %v70_v0, 7  ;;  %v709_v11 = vld [vmem:[#allocation7 + $0xa] sm:$0x3]  ;;  %v711_v12 = vld [vmem:[#allocation7 + $0x8] sm:$0x3]  ;;  %v767_v48 = vand.u32 127, %v70_v0 }
  0x39   :  { %v719_v15 = vld [vmem:[#allocation7 + $0xe] sm:$0x3]  ;;  %v721_v16 = vld [vmem:[#allocation7 + $0xc] sm:$0x3]  ;;  %v624_v46 = vmov 1966171168  }
  0x3a   :  { %v689_v2 = vsub.s32 0, %v686_v1  ;;  %v730_v19 = vsub.s32 1, %v686_v1  ;;  %v350_v47 = vunpack.c.l.s4 %v624_v46  ;;  %v250_v51 = vadd.s32 128, %v767_v48  ;;  %v776_v55 = vld [vmem:[#allocation2] sm:$0x3]  ;;  %s625_s22 = smov [#allocation8]  }
  0x3b   :  { %v61_v56 = vld [vmem:[#allocation5] sm:$0x3]  ;;  %v255_v57 = vand.u32 1, %v767_v48  ;;  %vm184_vm0 = vcmp.lt.s32.totalorder %v767_v48, 127  ;;  %vm233_vm1 = vcmp.lt.s32.totalorder %v767_v48, 1  ;;  %v786_v60 = vmul.f32 %v776_v55, %v691_v3  ;;  %s501_s23 = sshll.u32 %s625_s22, 4  ;;  %s502_s23 = int_to_ptr.vmem [resolvable:$true] %s501_s23 }
  0x3c   :  { %v89_v5 = vrot.slane %v691_v3, %v689_v2  ;;  %v73_v6 = vrot.slane %v693_v4, %v689_v2  ;;  %v97_v9 = vrot.slane %v699_v7, %v689_v2  ;;  %v81_v10 = vrot.slane %v701_v8, %v689_v2  ;;  %s589_s24 = scalar_lea.vmem %s502_s23, 256  ;;  %p594_p11 = scmp.lt.s32.totalorder %s502_s23, %s502_s23 }
  0x3d   :  { %v113_v13 = vrot.slane %v709_v11, %v689_v2  ;;  %v105_v14 = vrot.slane %v711_v12, %v689_v2  ;;  %v129_v17 = vrot.slane %v719_v15, %v689_v2  ;;  %v121_v18 = vrot.slane %v721_v16, %v689_v2  ;;  %p590_p10 = scmp.ne.s32.totalorder %s502_s23, %s589_s24  ;;  %p595_p12 = scmp.lt.s32.totalorder %s589_s24, %s589_s24 }
  0x3e   :  { %154 = vrot.lane.b32.xlu1 %v89_v5, %s622_s2  ;;  %150 = vrot.lane.b32.xlu0 %v73_v6, %s622_s2  ;;  %v85_v20 = vrot.slane %v701_v8, %v730_v19  ;;  %v77_v21 = vrot.slane %v693_v4, %v730_v19  ;;  %v101_v22 = vrot.slane %v699_v7, %v730_v19  ;;  %v351_v52 = vunpack.c.0.s8 %v350_v47 }
  0x3f   :  { %v93_v23 = vrot.slane %v691_v3, %v730_v19  ;;  %v117_v24 = vrot.slane %v709_v11, %v730_v19  ;;  %v109_v25 = vrot.slane %v711_v12, %v730_v19  ;;  %v133_v26 = vrot.slane %v719_v15, %v730_v19  ;;  %p596_p13 = por %p595_p12, %p594_p11 }
  0x40   :  { %v125_v27 = vrot.slane %v721_v16, %v730_v19  ;;  %v262_v58 = vand.u32 1, %v250_v51  ;;  %v782_v59 = vsub.s32 %v351_v52, %v686_v1  ;;  %v790_v61 = vmul.f32 %v776_v55, %v693_v4 }
  0x41   :  { %v794_v62 = vmul.f32 %v776_v55, %v699_v7  ;;  %v798_v63 = vmul.f32 %v776_v55, %v701_v8  ;;  %v806_v3 = vmul.f32 %v776_v55, %v709_v11  ;;  %v810_v4 = vmul.f32 %v776_v55, %v711_v12  ;;  %p597_p0 = pnand %p596_p13, %p590_p10 }
  0x42   :  { %156 = vrot.lane.b32.xlu1 %v97_v9, %s622_s2  ;;  %152 = vrot.lane.b32.xlu0 %v81_v10, %s622_s2  ;;  %v816_v7 = vrot.slane %v61_v56, %v730_v19  ;;  %vm822_vm2 = vcmp.eq.s32.totalorder %v255_v57, 0  ;;  %vm826_vm3 = vcmp.eq.s32.totalorder %v262_v58, 0  ;;  %vm855_vm4 = vcmp.lt.s32.totalorder %v70_v0, 256 }
  0x46   :  { %160 = vrot.lane.b32.xlu1 %v113_v13, %s622_s2  ;;  %158 = vrot.lane.b32.xlu0 %v105_v14, %s622_s2 }
  0x4a   :  { %164 = vrot.lane.b32.xlu1 %v129_v17, %s622_s2  ;;  %162 = vrot.lane.b32.xlu0 %v121_v18, %s622_s2 }
  0x4e   :  { %168 = vrot.lane.b32.xlu1 %v85_v20, %s622_s2  ;;  %166 = vrot.lane.b32.xlu0 %v77_v21, %s622_s2 }
  0x52   :  { %172 = vrot.lane.b32.xlu1 %v101_v22, %s622_s2  ;;  %170 = vrot.lane.b32.xlu0 %v93_v23, %s622_s2 }
  0x56   :  { %176 = vrot.lane.b32.xlu1 %v117_v24, %s622_s2  ;;  %174 = vrot.lane.b32.xlu0 %v109_v25, %s622_s2 }
  0x5a   :  { %180 = vrot.lane.b32.xlu1 %v133_v26, %s622_s2  ;;  %178 = vrot.lane.b32.xlu0 %v125_v27, %s622_s2 }
  0x5e   :  { %203 = vrot.lane.b32.xlu1 %v81_v10, %s623_s21  ;;  %201 = vrot.lane.b32.xlu0 %v73_v6, %s623_s21  ;;  %v813_v6 = vrot.slane %v61_v56, %v689_v2 }
  0x62   :  { %207 = vrot.lane.b32.xlu1 %v97_v9, %s623_s21  ;;  %205 = vrot.lane.b32.xlu0 %v89_v5, %s623_s21 }
  0x66   :  { %211 = vrot.lane.b32.xlu1 %v113_v13, %s623_s21  ;;  %209 = vrot.lane.b32.xlu0 %v105_v14, %s623_s21 }
  0x6a   :  { %215 = vrot.lane.b32.xlu1 %v129_v17, %s623_s21  ;;  %213 = vrot.lane.b32.xlu0 %v121_v18, %s623_s21 }
  0x6e   :  { %219 = vrot.lane.b32.xlu1 %v85_v20, %s623_s21  ;;  %217 = vrot.lane.b32.xlu0 %v77_v21, %s623_s21 }
  0x72   :  { %223 = vrot.lane.b32.xlu1 %v101_v22, %s623_s21  ;;  %221 = vrot.lane.b32.xlu0 %v93_v23, %s623_s21 }
  0x76   :  { %227 = vrot.lane.b32.xlu1 %v117_v24, %s623_s21  ;;  %225 = vrot.lane.b32.xlu0 %v109_v25, %s623_s21 }
  0x7a   :  { %231 = vrot.lane.b32.xlu1 %v133_v26, %s623_s21  ;;  %229 = vrot.lane.b32.xlu0 %v125_v27, %s623_s21 }
  0xb0   :  { %v155_v28 = vpop.permute.xlu1 %154  ;;  %v151_v29 = vpop.permute.xlu0 %150 }
  0xb4   :  { %v157_v30 = vpop.permute.xlu1 %156  ;;  %v153_v31 = vpop.permute.xlu0 %152 }
  0xb8   :  { %v161_v32 = vpop.permute.xlu1 %160  ;;  %v758_v33 = vpop.permute.xlu0 %158 }
  0xbc   :  { %v760_v34 = vpop.permute.xlu1 %164  ;;  %v762_v35 = vpop.permute.xlu0 %162 }
  0xc0   :  { %v169_v36 = vpop.permute.xlu1 %168  ;;  %v167_v37 = vpop.permute.xlu0 %166 }
  0xc1   :  { %v186_v8 = vsel %vm184_vm0, %v153_v31, %v169_v36  ;;  %v194_v9 = vsel %vm184_vm0, %v169_v36, %v153_v31  ;;  %v185_v2 = vsel %vm184_vm0, %v151_v29, %v167_v37  ;;  %v193_v12 = vsel %vm184_vm0, %v167_v37, %v151_v29 }
  0xc4   :  { %v173_v38 = vpop.permute.xlu1 %172  ;;  %v171_v39 = vpop.permute.xlu0 %170 }
  0xc5   :  { %v188_v13 = vsel %vm184_vm0, %v157_v30, %v173_v38  ;;  %v196_v14 = vsel %vm184_vm0, %v173_v38, %v157_v30  ;;  %v187_v17 = vsel %vm184_vm0, %v155_v28, %v171_v39  ;;  %v195_v18 = vsel %vm184_vm0, %v171_v39, %v155_v28 }
  0xc8   :  { %v177_v40 = vpop.permute.xlu1 %176  ;;  %v175_v41 = vpop.permute.xlu0 %174 }
  0xc9   :  { %v190_v19 = vsel %vm184_vm0, %v161_v32, %v177_v40  ;;  %v198_v20 = vsel %vm184_vm0, %v177_v40, %v161_v32  ;;  %v189_v38 = vsel %vm184_vm0, %v758_v33, %v175_v41  ;;  %v197_v39 = vsel %vm184_vm0, %v175_v41, %v758_v33 }
  0xcc   :  { %v181_v42 = vpop.permute.xlu1 %180  ;;  %v764_v43 = vpop.permute.xlu0 %178 }
  0xcd   :  { %v192_v40 = vsel %vm184_vm0, %v760_v34, %v181_v42 }
  0xd0   :  { %v204_v44 = vpop.permute.xlu1 %203  ;;  %v202_v45 = vpop.permute.xlu0 %201 }
  0xd4   :  { %v208_v49 = vpop.permute.xlu1 %207  ;;  %v769_v50 = vpop.permute.xlu0 %205 }
  0xd8   :  { %v772_v53 = vpop.permute.xlu1 %211  ;;  %v774_v54 = vpop.permute.xlu0 %209 }
  0xdc   :  { %v800_v5 = vpop.permute.xlu1 %215  ;;  %v802_v1 = vpop.permute.xlu0 %213 }
  0xe0   :  { %v220_v21 = vpop.permute.xlu1 %219  ;;  %v218_v22 = vpop.permute.xlu0 %217 }
  0xe1   :  { %v235_v23 = vsel %vm233_vm1, %v204_v44, %v220_v21  ;;  %v243_v24 = vsel %vm233_vm1, %v220_v21, %v204_v44  ;;  %v234_v25 = vsel %vm233_vm1, %v202_v45, %v218_v22  ;;  %v242_v26 = vsel %vm233_vm1, %v218_v22, %v202_v45 }
  0xe2   :  { %v283_v28 = vsel %vm822_vm2, %v186_v8, %v243_v24  ;;  %v284_v29 = vsel %vm826_vm3, %v194_v9, %v235_v23  ;;  %v281_v30 = vsel %vm822_vm2, %v185_v2, %v242_v26  ;;  %v282_v31 = vsel %vm826_vm3, %v193_v12, %v234_v25 }
  0xe3   :  { %v318_v32 = vmul.f32 %v813_v6, %v283_v28  ;;  %v319_v36 = vmul.f32 %v816_v7, %v284_v29  ;;  %v316_v0 = vmul.f32 %v813_v6, %v281_v30  ;;  %v317_v37 = vmul.f32 %v816_v7, %v282_v31 }
  0xe4   :  { %v200_v44 = vsel %vm184_vm0, %v181_v42, %v760_v34  ;;  %v224_v45 = vpop.permute.xlu1 %223  ;;  %v222_v46 = vpop.permute.xlu0 %221  ;;  %v191_v9 = vsel %vm184_vm0, %v762_v35, %v764_v43  ;;  %v199_v2 = vsel %vm184_vm0, %v764_v43, %v762_v35 }
  0xe5   :  { %v363_v47 = vcombine.low %v318_v32, %v319_v36  ;;  %v348_v51 = vcombine.low %v316_v0, %v317_v37  ;;  %v237_v52 = vsel %vm233_vm1, %v208_v49, %v224_v45  ;;  %v245_v56 = vsel %vm233_vm1, %v224_v45, %v208_v49 }
  0xe6   :  { %v287_v33 = vsel %vm822_vm2, %v188_v13, %v245_v56  ;;  %v288_v41 = vsel %vm826_vm3, %v196_v14, %v237_v52  ;;  %v236_v34 = vsel %vm233_vm1, %v769_v50, %v222_v46  ;;  %v244_v42 = vsel %vm233_vm1, %v222_v46, %v769_v50 }
  0xe7   :  { %v370_v57 = vrot.slane %v363_v47, %v782_v59  ;;  %v355_v58 = vrot.slane %v348_v51, %v782_v59  ;;  %v322_v49 = vmul.f32 %v813_v6, %v287_v33  ;;  %v323_v8 = vmul.f32 %v816_v7, %v288_v41 }
  0xe8   :  { %v285_v50 = vsel %vm822_vm2, %v187_v17, %v244_v42  ;;  %v286_v12 = vsel %vm826_vm3, %v195_v18, %v236_v34  ;;  %v228_v13 = vpop.permute.xlu1 %227  ;;  %v226_v14 = vpop.permute.xlu0 %225 }
  0xe9   :  { %v377_v21 = vrot.slane %v370_v57, %v782_v59  ;;  %v362_v22 = vrot.slane %v355_v58, %v782_v59  ;;  %v393_v23 = vcombine.low %v322_v49, %v323_v8  ;;  %v320_v24 = vmul.f32 %v813_v6, %v285_v50 }
  0xea   :  { %v321_v25 = vmul.f32 %v816_v7, %v286_v12  ;;  %v239_v35 = vsel %vm233_vm1, %v772_v53, %v228_v13  ;;  %v247_v43 = vsel %vm233_vm1, %v228_v13, %v772_v53  ;;  %v238_v17 = vsel %vm233_vm1, %v774_v54, %v226_v14 }
  0xeb   :  { %v477_v18 = vadd.f32 %v377_v21, %v798_v63  ;;  %v476_v26 = vadd.f32 %v362_v22, %v790_v61  ;;  %v400_v28 = vrot.slane %v393_v23, %v782_v59  ;;  %v291_v29 = vsel %vm822_vm2, %v190_v19, %v247_v43 }
  0xec   :  { %v378_v30 = vcombine.low %v320_v24, %v321_v25  ;;  %v292_v31 = vsel %vm826_vm3, %v198_v20, %v239_v35  ;;  %v326_v32 = vmul.f32 %v813_v6, %v291_v29  ;;  %v246_v53 = vsel %vm233_vm1, %v226_v14, %v774_v54  ;;  %v232_v36 = vpop.permute.xlu1 %231  ;;  %v230_v46 = vpop.permute.xlu0 %229 }
  0xed   :  { %489 = vst.msk [vmem:[#allocation8 + $0x2] sm:$0x3] %vm855_vm4, %v477_v18  ;;  %488 = vst.msk [vmem:[#allocation8] sm:$0x3] %vm855_vm4, %v476_v26  ;;  %v407_v61 = vrot.slane %v400_v28, %v782_v59  ;;  %v327_v63 = vmul.f32 %v816_v7, %v292_v31  ;;  %v289_v19 = vsel %vm822_vm2, %v189_v38, %v246_v53 }
  0xee   :  { %v290_v20 = vsel %vm826_vm3, %v197_v39, %v238_v17  ;;  %v385_v0 = vrot.slane %v378_v30, %v782_v59  ;;  %v324_v54 = vmul.f32 %v813_v6, %v289_v19  ;;  %v241_v45 = vsel %vm233_vm1, %v800_v5, %v232_v36 }
  0xef   :  { %v325_v37 = vmul.f32 %v816_v7, %v290_v20  ;;  %v479_v47 = vadd.f32 %v407_v61, %v794_v62  ;;  %v423_v51 = vcombine.low %v326_v32, %v327_v63  ;;  %v249_v38 = vsel %vm233_vm1, %v232_v36, %v800_v5 }
  0xf0   :  { %v296_v39 = vsel %vm826_vm3, %v200_v44, %v241_v45  ;;  %v392_v52 = vrot.slane %v385_v0, %v782_v59  ;;  %v295_v33 = vsel %vm822_vm2, %v192_v40, %v249_v38  ;;  %v240_v5 = vsel %vm233_vm1, %v802_v1, %v230_v46 }
  0xf1   :  { %v408_v56 = vcombine.low %v324_v54, %v325_v37  ;;  %v331_v41 = vmul.f32 %v816_v7, %v296_v39  ;;  %491 = vst.msk [vmem:[#allocation8 + $0x6] sm:$0x3] %vm855_vm4, %v479_v47  ;;  %v430_v62 = vrot.slane %v423_v51, %v782_v59  ;;  %v330_v34 = vmul.f32 %v813_v6, %v295_v33 }
  0xf2   :  { %v248_v44 = vsel %vm233_vm1, %v230_v46, %v802_v1  ;;  %v478_v42 = vadd.f32 %v392_v52, %v786_v60  ;;  %v294_v58 = vsel %vm826_vm3, %v199_v2, %v240_v5  ;;  %v304_v60 = vmul.f32 %v776_v55, %v719_v15 }
  0xf3   :  { %v415_v40 = vrot.slane %v408_v56, %v782_v59  ;;  %v293_v57 = vsel %vm822_vm2, %v191_v9, %v248_v44  ;;  %v437_v49 = vrot.slane %v430_v62, %v782_v59  ;;  %v453_v8 = vcombine.low %v330_v34, %v331_v41 }
  0xf4   :  { %v328_v50 = vmul.f32 %v813_v6, %v293_v57  ;;  %v329_v12 = vmul.f32 %v816_v7, %v294_v58  ;;  %490 = vst.msk [vmem:[#allocation8 + $0x4] sm:$0x3] %vm855_vm4, %v478_v42  ;;  %v303_v6 = vmul.f32 %v776_v55, %v721_v16 }
  0xf5   :  { %v422_v48 = vrot.slane %v415_v40, %v782_v59  ;;  %v481_v1 = vadd.f32 %v437_v49, %v806_v3  ;;  %v460_v10 = vrot.slane %v453_v8, %v782_v59 }
  0xf6   :  { %v438_v11 = vcombine.low %v328_v50, %v329_v12 }
  0xf7   :  { %v480_v9 = vadd.f32 %v422_v48, %v810_v4  ;;  %493 = vst.msk [vmem:[#allocation8 + $0xa] sm:$0x3] %vm855_vm4, %v481_v1  ;;  %v467_v7 = vrot.slane %v460_v10, %v782_v59 }
  0xf8   :  { %v445_v2 = vrot.slane %v438_v11, %v782_v59 }
  0xf9   :  { %492 = vst.msk [vmem:[#allocation8 + $0x8] sm:$0x3] %vm855_vm4, %v480_v9  ;;  %v483_v15 = vadd.f32 %v467_v7, %v304_v60 }
  0xfa   :  { %v452_v3 = vrot.slane %v445_v2, %v782_v59 }
  0xfb   :  { %495 = vst.msk [vmem:[#allocation8 + $0xe] sm:$0x3] %vm855_vm4, %v483_v15 }
  0xfc   :  { %v482_v4 = vadd.f32 %v452_v3, %v303_v6 }
  0xfe   :  { %494 = vst.msk [vmem:[#allocation8 + $0xc] sm:$0x3] %vm855_vm4, %v482_v4 }
  0xff   :  { %600 = shalt.err (!%p597_p0)
}
 0x100   :  { %s601_s27 = scalar_lea.hbm %s1021_s3, 256 }
 0x101   :  { %p602_p1 = scmp.ne.s32.totalorder %s1021_s3, %s601_s27  ;;  %p605_p2 = scmp.lt.u32.totalorder %s601_s27, %s1021_s3 }
 0x103   :  { %p607_p3 = pnand %p605_p2, %p602_p1 }
 0x105   :  { %610 = shalt.err (!%p607_p3)
}
 0x106   :  { %507 = dma.vmem_to_hbm [thread:$0]  %s502_s23, 256, %s1021_s3, [#allocation4], %s620_s0, %s620_s0, %s621_s15  }
 0x107   :  { %615 = dma.done.wait [#allocation4], 256  }
 0x108   :  { %616 = vsyncadd [#allocation4], 4294967040 }
 0x109   :  { %511 = vsyncpa [#allocation3], 1 }
 0x10a   :  { %512 = vsyncpa [#allocation6], 1 }
 0x10b   :  { %513 = vsyncpa [#allocation4], 1 }

</bundles_post_ra>
